<compile_context>
chip_gen: v7x
topology: tpu7x:2x2x1
jax: 0.10.0
libtpu: 0.0.40
codegen_flags: <defaults>
</compile_context>

<pallas_src>
import jax
import jax.numpy as jnp
from jax.experimental import pallas as pl
from jax.experimental.pallas import tpu as pltpu

_MIB = 1024 * 1024


# ----------------------------------------------------------------------------
# Kernels
# ----------------------------------------------------------------------------
def _se_fused_kernel(x_ref, w1t_ref, w2t_ref, o_ref):
    # x_ref: (1, C, HW); w1t_ref: (C, Cr); w2t_ref: (Cr, C); o_ref: (1, C, HW)
    x = x_ref[...]

    # Squeeze: global average pool over the spatial (lane) axis, f32 accumulate.
    pooled = jnp.mean(x, axis=-1, dtype=jnp.float32)                  # (1, C)

    # Excitation: Linear -> ReLU -> Linear -> Sigmoid (tiny, once per batch).
    h = jnp.dot(pooled, w1t_ref[...].astype(jnp.float32),
                preferred_element_type=jnp.float32)                   # (1, Cr)
    h = jnp.maximum(h, 0.0)
    logits = jnp.dot(h, w2t_ref[...].astype(jnp.float32),
                     preferred_element_type=jnp.float32)              # (1, C)
    y = pl.reciprocal(1.0 + jnp.exp(-logits), approx=True)            # sigmoid (EUP)

    # Scale: broadcast (1, C) over the spatial axis in the input dtype.
    o_ref[...] = (x * y.astype(x.dtype)[:, :, None]).astype(o_ref.dtype)


def _make_pool_sum_kernel(hw, hw_tile, needs_mask):
    """Pass 1 of the tiled path: per-(batch, channel) sums across HW tiles."""
    def kernel(x_ref, sum_ref):
        # x_ref: (1, C, hw_tile); sum_ref: (1, 1, C) f32, resident across HW tiles.
        j = pl.program_id(1)

        @pl.when(j == 0)
        def _():
            sum_ref[...] = jnp.zeros_like(sum_ref)

        x = x_ref[...]
        if needs_mask:
            # Partial last tile: lanes past the true HW extent hold undefined
            # data — zero them before the reduction.
            col = j * hw_tile + jax.lax.broadcasted_iota(jnp.int32, x.shape, 2)
            x = jnp.where(col < hw, x, jnp.zeros((), x.dtype))
        part = jnp.sum(x, axis=-1, dtype=jnp.float32)                 # (1, C)
        sum_ref[...] += part[:, None, :]                              # (1, 1, C)
    return kernel


def _make_scale_mlp_kernel(inv_hw):
    """Pass 2 of the tiled path: excitation MLP folded into the streaming scale."""
    def kernel(x_ref, sum_ref, w1t_ref, w2t_ref, o_ref):
        # x_ref/o_ref: (1, C, hw_tile); sum_ref: (1, 1, C) f32;
        # w1t_ref: (C, Cr); w2t_ref: (Cr, C).
        # The MLP is recomputed per spatial tile: a few-K-FLOP MXU op hidden
        # under the tile DMA; avoids a resident scratch so both grid axes stay
        # "parallel" (v7x megacore can shard spatial tiles across both TCs).
        pooled = sum_ref[...].reshape(1, -1) * jnp.float32(inv_hw)    # (1, C)
        h = jnp.maximum(jnp.dot(pooled, w1t_ref[...].astype(jnp.float32),
                                preferred_element_type=jnp.float32), 0.0)
        logits = jnp.dot(h, w2t_ref[...].astype(jnp.float32),
                         preferred_element_type=jnp.float32)          # (1, C)
        y = pl.reciprocal(1.0 + jnp.exp(-logits), approx=True)        # sigmoid (EUP)
        x = x_ref[...]
        o_ref[...] = (x * y.astype(x.dtype)[:, :, None]).astype(o_ref.dtype)
    return kernel


# ----------------------------------------------------------------------------
# Wrappers
# ----------------------------------------------------------------------------
def _vmem_budget_bytes():
    """Generation-aware Mosaic VMEM limit: ~96 MiB on 128-MiB parts (v5e/v6e),
    ~60% of physical on 64-MiB parts (v7x)."""
    phys = 64 * _MIB
    try:
        info = pltpu.get_tpu_info()
        phys = int(getattr(info, "vmem_capacity_bytes", phys) or phys)
    except Exception:
        pass
    if phys >= 96 * _MIB:
        return 96 * _MIB
    return int(phys * 0.6)


def _pick_hw_tile(c, hw, itemsize, target_bytes):
    """Largest 128-multiple lane tile with c * tile * itemsize <= target (and
    at least 128 lanes).  HW need not divide it — the grid uses pl.cdiv and the
    pool kernel masks the partial last tile."""
    lanes = (target_bytes // max(1, c * itemsize)) // 128 * 128
    lanes = max(128, lanes)
    hw_padded = -(-hw // 128) * 128
    return int(min(lanes, hw_padded))


def _se_fused(x_flat, w1t, w2t, vmem_limit, donate_x):
    b, c, hw = x_flat.shape
    cr = w1t.shape[1]
    itemsize = jnp.dtype(x_flat.dtype).itemsize
    cost = pl.CostEstimate(
        flops=2 * b * c * hw + 4 * b * c * cr,
        transcendentals=b * c,
        bytes_accessed=2 * b * c * hw * itemsize + 2 * c * cr * 4,
    )
    return pl.pallas_call(
        _se_fused_kernel,
        out_shape=jax.ShapeDtypeStruct((b, c, hw), x_flat.dtype),
        grid_spec=pltpu.PrefetchScalarGridSpec(
            num_scalar_prefetch=0,
            grid=(b,),
            in_specs=[
                pl.BlockSpec((1, c, hw), lambda i: (i, 0, 0)),
                pl.BlockSpec((c, cr), lambda i: (0, 0)),
                pl.BlockSpec((cr, c), lambda i: (0, 0)),
            ],
            out_specs=pl.BlockSpec((1, c, hw), lambda i: (i, 0, 0)),
        ),
        compiler_params=pltpu.CompilerParams(
            dimension_semantics=("parallel",),
            vmem_limit_bytes=vmem_limit,
        ),
        cost_estimate=cost,
        input_output_aliases=({0: 0} if donate_x else {}),
    )(x_flat, w1t, w2t)


def _se_tiled(x_flat, w1t, w2t, hw_tile, vmem_limit, donate_x):
    b, c, hw = x_flat.shape
    cr = w1t.shape[1]
    itemsize = jnp.dtype(x_flat.dtype).itemsize
    n_hw = pl.cdiv(hw, hw_tile)
    needs_mask = (hw % hw_tile) != 0

    # Pass 1: pooled sums (B, 1, C) f32, output block resident across HW tiles.
    sums = pl.pallas_call(
        _make_pool_sum_kernel(hw, hw_tile, needs_mask),
        out_shape=jax.ShapeDtypeStruct((b, 1, c), jnp.float32),
        grid_spec=pltpu.PrefetchScalarGridSpec(
            num_scalar_prefetch=0,
            grid=(b, n_hw),
            in_specs=[pl.BlockSpec((1, c, hw_tile), lambda i, j: (i, 0, j))],
            out_specs=pl.BlockSpec((1, 1, c), lambda i, j: (i, 0, 0)),
        ),
        compiler_params=pltpu.CompilerParams(
            dimension_semantics=("parallel", "arbitrary"),
            vmem_limit_bytes=vmem_limit,
        ),
        cost_estimate=pl.CostEstimate(
            flops=b * c * hw, transcendentals=0,
            bytes_accessed=b * c * hw * itemsize + b * c * 4),
    )(x_flat)

    # Pass 2: excitation MLP + sigmoid folded into the streaming scale pass
    # (no intervening XLA dispatch, no (B, C, 1) gate array in HBM).
    return pl.pallas_call(
        _make_scale_mlp_kernel(1.0 / hw),
        out_shape=jax.ShapeDtypeStruct((b, c, hw), x_flat.dtype),
        grid_spec=pltpu.PrefetchScalarGridSpec(
            num_scalar_prefetch=0,
            grid=(b, n_hw),
            in_specs=[
                pl.BlockSpec((1, c, hw_tile), lambda i, j: (i, 0, j)),
                pl.BlockSpec((1, 1, c), lambda i, j: (i, 0, 0)),
                pl.BlockSpec((c, cr), lambda i, j: (0, 0)),
                pl.BlockSpec((cr, c), lambda i, j: (0, 0)),
            ],
            out_specs=pl.BlockSpec((1, c, hw_tile), lambda i, j: (i, 0, j)),
        ),
        compiler_params=pltpu.CompilerParams(
            dimension_semantics=("parallel", "parallel"),
            vmem_limit_bytes=vmem_limit,
        ),
        cost_estimate=pl.CostEstimate(
            flops=2 * b * c * hw + 4 * b * c * cr * n_hw,
            transcendentals=b * c * n_hw,
            bytes_accessed=2 * b * c * hw * itemsize + b * c * 4 + 2 * c * cr * 4),
        input_output_aliases=({0: 0} if donate_x else {}),
    )(x_flat, sums, w1t, w2t)


def se_layer(x_nchw, w1, w2, *, donate_x=False,
             max_fused_bytes=None, tile_target_bytes=None):
    """SELayer forward.  x: (B, C, H, W); w1: (C//r, C); w2: (C, C//r).

    Weight layouts follow torch.nn.Linear(bias=False): (out_features, in_features).
    `max_fused_bytes` / `tile_target_bytes` override the auto policy (tests).
    """
    b, c, h, w = x_nchw.shape
    hw = h * w
    x_flat = x_nchw.reshape(b, c, hw)
    w1t = jnp.transpose(w1)  # (C, Cr)
    w2t = jnp.transpose(w2)  # (Cr, C)
    itemsize = jnp.dtype(x_nchw.dtype).itemsize
    slab_bytes = c * hw * itemsize

    vmem_limit = _vmem_budget_bytes()
    # Fused path keeps x double-buffered in and out (~4 slabs live) + weights.
    fused_cap = (max_fused_bytes if max_fused_bytes is not None
                 else vmem_limit // 5)
    tile_target = (tile_target_bytes if tile_target_bytes is not None
                   else min(4 * _MIB, max(_MIB, vmem_limit // 10)))

    # v7x heuristic (64-MiB-VMEM parts have 2 TensorCores): at B == 1 the fused
    # grid=(B,) exposes no parallel or pipelined steps, so a large single-batch
    # slab prefers the streaming tiled path.
    small_vmem_part = vmem_limit < 64 * _MIB
    prefer_tiled = (small_vmem_part and b < 2 and hw > 128
                    and slab_bytes >= 4 * _MIB)

    if hw > 128 and (slab_bytes > fused_cap or prefer_tiled):
        hw_tile = _pick_hw_tile(c, hw, itemsize, tile_target)
        return _se_tiled(x_flat, w1t, w2t, hw_tile, vmem_limit,
                         donate_x).reshape(b, c, h, w)
    # TODO(synk): a degenerate HW <= 128 with an enormous C could still exceed
    # the fused VMEM budget; real SE layers never hit this shape.
    return _se_fused(x_flat, w1t, w2t, vmem_limit,
                     donate_x).reshape(b, c, h, w)


# ----------------------------------------------------------------------------
# Reference + test
# ----------------------------------------------------------------------------
def _reference(x, w1, w2):
    y = jnp.mean(x.astype(jnp.float32), axis=(2, 3))                  # (B, C)
    y = jnp.maximum(y @ w1.astype(jnp.float32).T, 0.0)                # (B, Cr)
    y = jax.nn.sigmoid(y @ w2.astype(jnp.float32).T)                  # (B, C)
    return (x.astype(jnp.float32) * y[:, :, None, None]).astype(x.dtype)


if __name__ == "__main__":
    B, C, RED = 2, 32, 16
    CR = C // RED

    key = jax.random.PRNGKey(0)
    kx, k1, k2, kx2, kx3 = jax.random.split(key, 5)
    # Linear(bias=False) weight shapes: (out_features, in_features)
    w1 = jax.random.normal(k1, (CR, C), dtype=jnp.float32) * (1.0 / jnp.sqrt(C))
    w2 = jax.random.normal(k2, (C, CR), dtype=jnp.float32) * (1.0 / jnp.sqrt(CR))

    # Tolerance 5e-3: the sigmoid denominator uses the EUP fast reciprocal
    # (pl.reciprocal(..., approx=True)); real bugs are O(0.1) or larger.
    TOL = dict(atol=5e-3, rtol=5e-3)

    # 1) Fused single-pass path (per-batch slab fits the VMEM block budget).
    x = jax.random.normal(kx, (B, C, 8, 8), dtype=jnp.float32)
    out = jax.block_until_ready(se_layer(x, w1, w2))
    assert out.shape == x.shape
    assert jnp.allclose(out, _reference(x, w1, w2), **TOL), "fused path mismatch"

    # 2) Tiled two-pass path, HW an exact multiple of the 128-lane tile
    #    (forced via the policy overrides): HW = 256 -> two unmasked tiles.
    x2 = jax.random.normal(kx2, (B, C, 16, 16), dtype=jnp.float32)
    out2 = jax.block_until_ready(
        se_layer(x2, w1, w2, max_fused_bytes=0, tile_target_bytes=16 * 1024))
    assert out2.shape == x2.shape
    assert jnp.allclose(out2, _reference(x2, w1, w2), **TOL), "tiled path mismatch"

    # 3) Tiled path with HW NOT a multiple of 128 (HW = 400 -> pl.cdiv grid of
    #    4 tiles, partial last tile exercised through the in-kernel lane mask).
    x3 = jax.random.normal(kx3, (B, C, 20, 20), dtype=jnp.float32)
    out3 = jax.block_until_ready(
        se_layer(x3, w1, w2, max_fused_bytes=0, tile_target_bytes=16 * 1024))
    assert out3.shape == x3.shape
    assert jnp.allclose(out3, _reference(x3, w1, w2), **TOL), "masked tile mismatch"

    print("KERNEL_OK")
</pallas_src>

<mosaic_0001>
module attributes {stable_mosaic.version = 11 : i64} {
  func.func @_se_fused_kernel(%arg0: i32, %arg1: memref<1x32x64xf32, #tpu.memory_space<vmem>>, %arg2: memref<32x2xf32, #tpu.memory_space<vmem>>, %arg3: memref<2x32xf32, #tpu.memory_space<vmem>>, %arg4: memref<1x32x64xf32, #tpu.memory_space<vmem>>) attributes {dimension_semantics = [#tpu.dimension_semantics<parallel>], iteration_bounds = array<i64: 2>, scalar_prefetch = 0 : i64, scratch_operands = 0 : i64, tpu.core_type = #tpu.core_type<tc>, window_params = [{transform_indices = @transform_0, window_bounds = array<i64: 1, 32, 64>}, {pipeline_mode = #tpu.pipeline_mode<synchronous>, transform_indices = @transform_1, window_bounds = array<i64: 32, 2>}, {pipeline_mode = #tpu.pipeline_mode<synchronous>, transform_indices = @transform_2, window_bounds = array<i64: 2, 32>}, {transform_indices = @transform_3, window_bounds = array<i64: 1, 32, 64>}]} {
    %c0 = arith.constant 0 : index
    %c0_0 = arith.constant 0 : index
    %c0_1 = arith.constant 0 : index
    %0 = vector.load %arg1[%c0, %c0_0, %c0_1] : memref<1x32x64xf32, #tpu.memory_space<vmem>>, vector<1x32x64xf32>
    %cst = arith.constant dense<0.000000e+00> : vector<1x32xf32>
    %1 = vector.multi_reduction <add>, %0, %cst [2] : vector<1x32x64xf32> to vector<1x32xf32>
    %cst_2 = arith.constant 6.400000e+01 : f32
    %2 = vector.broadcast %cst_2 : f32 to vector<1x32xf32>
    %3 = arith.divf %1, %2 : vector<1x32xf32>
    %c0_3 = arith.constant 0 : index
    %c0_4 = arith.constant 0 : index
    %4 = vector.load %arg2[%c0_3, %c0_4] : memref<32x2xf32, #tpu.memory_space<vmem>>, vector<32x2xf32>
    %cst_5 = arith.constant dense<0.000000e+00> : vector<1x2xf32>
    %5 = tpu.matmul %3, %4, %cst_5 {dimension_numbers = #tpu.dot_dimension_numbers<[1], [0], [0], [1], [0, 0, 1, 1], [], []>} : vector<1x32xf32>, vector<32x2xf32>, vector<1x2xf32> -> vector<1x2xf32>
    %cst_6 = arith.constant 0.000000e+00 : f32
    %6 = vector.broadcast %cst_6 : f32 to vector<1x2xf32>
    %7 = arith.maximumf %5, %6 : vector<1x2xf32>
    %c0_7 = arith.constant 0 : index
    %c0_8 = arith.constant 0 : index
    %8 = vector.load %arg3[%c0_7, %c0_8] : memref<2x32xf32, #tpu.memory_space<vmem>>, vector<2x32xf32>
    %cst_9 = arith.constant dense<0.000000e+00> : vector<1x32xf32>
    %9 = tpu.matmul %7, %8, %cst_9 {dimension_numbers = #tpu.dot_dimension_numbers<[1], [0], [0], [1], [0, 0, 1, 1], [], []>} : vector<1x2xf32>, vector<2x32xf32>, vector<1x32xf32> -> vector<1x32xf32>
    %cst_10 = arith.constant 0.000000e+00 : f32
    %10 = vector.broadcast %cst_10 : f32 to vector<1x32xf32>
    %11 = arith.subf %10, %9 : vector<1x32xf32>
    %12 = math.exp %11 : vector<1x32xf32>
    %cst_11 = arith.constant 1.000000e+00 : f32
    %13 = vector.broadcast %cst_11 : f32 to vector<1x32xf32>
    %14 = arith.addf %13, %12 : vector<1x32xf32>
    %15 = tpu.reciprocal %14 {approx = true} : vector<1x32xf32> -> vector<1x32xf32>
    %16 = vector.shape_cast %15 : vector<1x32xf32> to vector<1x32x1xf32>
    %17 = vector.broadcast %16 : vector<1x32x1xf32> to vector<1x32x64xf32>
    %18 = arith.mulf %0, %17 : vector<1x32x64xf32>
    %c0_12 = arith.constant 0 : index
    %c0_13 = arith.constant 0 : index
    %c0_14 = arith.constant 0 : index
    %19 = vector.load %arg4[%c0_12, %c0_13, %c0_14] : memref<1x32x64xf32, #tpu.memory_space<vmem>>, vector<1x32x64xf32>
    tpu.vector_store %arg4[%c0_12, %c0_13, %c0_14], %18 {strides = array<i32>} : memref<1x32x64xf32, #tpu.memory_space<vmem>>, vector<1x32x64xf32>,
    return
  }
  func.func @transform_0(%arg0: i32) -> (i32, i32, i32) {
    %c0_i32 = arith.constant 0 : i32
    %c0_i32_0 = arith.constant 0 : i32
    %c0_i32_1 = arith.constant 0 : i32
    return %arg0, %c0_i32, %c0_i32_0 : i32, i32, i32
  }
  func.func @transform_1(%arg0: i32) -> (i32, i32) {
    %c0_i32 = arith.constant 0 : i32
    %c0_i32_0 = arith.constant 0 : i32
    %c0_i32_1 = arith.constant 0 : i32
    return %c0_i32, %c0_i32_0 : i32, i32
  }
  func.func @transform_2(%arg0: i32) -> (i32, i32) {
    %c0_i32 = arith.constant 0 : i32
    %c0_i32_0 = arith.constant 0 : i32
    %c0_i32_1 = arith.constant 0 : i32
    return %c0_i32, %c0_i32_0 : i32, i32
  }
  func.func @transform_3(%arg0: i32) -> (i32, i32, i32) {
    %c0_i32 = arith.constant 0 : i32
    %c0_i32_0 = arith.constant 0 : i32
    %c0_i32_1 = arith.constant 0 : i32
    return %arg0, %c0_i32, %c0_i32_0 : i32, i32, i32
  }
}

</mosaic_0001>

<bundles_post_ra>
// kernel: tpu_custom_call.1
= control target key start
LH: loop header
LB: loop body
LE: loop exit
PB: predicated region body
PF: predicated region fallthrough
CT: control target
= control target key end

     0   :  { %8 = vsyncpa [#allocation3], 0  ;;  %s955_s0 = inlined_call_operand.hbm [shape: f32[2,32,64], index: 0, kind: input, shape index: {}]   ;;  %s956_s1 = inlined_call_operand.vmem [shape: f32[32,2], index: 1, kind: input, shape index: {}]   ;;  %s957_s2 = inlined_call_operand.vmem [shape: f32[2,32], index: 2, kind: input, shape index: {}]   ;;  %s958_s3 = inlined_call_operand.hbm [shape: f32[2,32,64], index: 3, kind: output, shape index: {}]  }
   0x1   :  { %10 = vsyncpa [#allocation3 + $0x1], 0 }
   0x2   :  { %11 = vsyncpa [#allocation4], 0 }
   0x3   :  { %13 = vsyncpa [#allocation4 + $0x1], 0  ;;  %s750_s12 = smov 0   ;;  %s752_s13 = smov 0  }
   0x4   :  { %s754_s14 = smov 0   ;;  %s756_s15 = smov 0  }
   0x5 LB: > { %s771_s16 = sadd.s32 4294967295, %s719_s15   ;;  %s518_s17 = sadd.s32 4294967294, %s719_s15   ;;  %s719_s15 = sphi %s756_s15, %s971_s15   ;;  %s715_s14 = sphi %s754_s14, %s970_s14   ;;  %s711_s13 = sphi %s752_s13, %s969_s13   ;;  %s707_s12 = sphi %s750_s12, %s968_s12  }
   0x6   : > { %s775_s18 = sadd.s32 1, %s719_s15   ;;  %s26_s19 = sadd.s32 1, %s715_s14 }
   0x7   : > { %s23_s20 = ssub.s32 %s719_s15, %s775_s18  ;;  %p33_p0 = scmp.ne.s32.totalorder %s715_s14, %s711_s13 }
   0x8   : > { %p24_p1 = scmp.eq.s32.totalorder %s23_s20, 0  ;;  %p34_p2 = scmp.eq.s32.totalorder %s719_s15, 0 }
   0x9   : > { %p39_p3 = scmp.ne.s32.totalorder %s711_s13, %s707_s12  ;;  %p40_p4 = scmp.eq.s32.totalorder %s771_s16, 0 }
   0xa   : > { %s787_s21 = scalar_select %p24_p1, %s715_s14, %s26_s19  }
   0xb   : > { %p789_p5 = por %p34_p2, %p33_p0  ;;  %p793_p6 = por %p40_p4, %p39_p3 }
   0xc   : > { %p105_p7 = scmp.eq.s32.totalorder %s771_s16, 1  ;;  %p111_p8 = scmp.eq.s32.totalorder %s518_s17, 1 }
   0xd   : > { %p578_p10 = scmp.lt.s32.totalorder %s719_s15, 2  ;;  %s137_s26 = sand.u32 1, %s715_s14  }
   0xe   : > { %p800_p11 = por %p105_p7, %p33_p0  ;;  %p804_p12 = por %p111_p8, %p39_p3 }
   0xf   : > { %s535_s27 = sshll.u32 %s719_s15, 9  ;;  %s521_s28 = sshll.u32 %s137_s26, 5 }
  0x10   : > { %s962_s24 = scalar_select %p800_p11, 1, 0 }
  0x11   : > { %s963_s25 = scalar_select %p804_p12, 1, 0 }
  0x12   : > { %s813_s4 = scalar_lea.hbm %s955_s0, %s535_s27  ;;  %s141_s5 = scalar_lea.vmem [#allocation2], %s521_s28 }
  0x13   : > { %s148_s6 = sshll.u32 %s141_s5, 4  ;;  %p817_p13 = pnand %p578_p10, %p789_p5  ;;  %s821_s6 = int_to_ptr.vmem [resolvable:$true] %s148_s6 }
  0x14   : > { %s823_s8 = scalar_lea.sflag [#allocation3], %s137_s26  ;;  %s623_s9 = scalar_lea.hbm %s813_s4, 512 }
  0x15   : > { %p624_p0 = scmp.ne.s32.totalorder %s813_s4, %s623_s9  ;;  %p625_p1 = pneg %p817_p13 }
  0x16   : > { %s628_s17 = scalar_lea.hbm %s955_s0, 1024  ;;  %p629_p4 = scmp.lt.u32.totalorder %s813_s4, %s955_s0 }
  0x17   : > { %p626_p2 = pnand %p625_p1, %p624_p0  ;;  %p630_p5 = scmp.lt.u32.totalorder %s628_s17, %s623_s9 }
  0x18   : > { %p632_p8 = scmp.lt.u32.totalorder %s623_s9, %s813_s4 }
  0x19   : > { %p627_p3 = pneg %p626_p2  ;;  %p631_p7 = por %p630_p5, %p629_p4 }
  0x1b   : > { %p633_p10 = por %p632_p8, %p631_p7 }
  0x1d   : > { %p634_p9 = pnand %p633_p10, %p627_p3 }
  0x1f   : > { %637 = shalt.err (!%p634_p9)
}
  0x20   : > { %s638_s22 = scalar_lea.vmem %s821_s6, 512  ;;  %s721_s26 = smov [#allocation2]  }
  0x21   : > { %p639_p0 = scmp.ne.s32.totalorder %s821_s6, %s638_s22  ;;  %s643_s27 = sshll.u32 %s721_s26, 4  ;;  %s644_s27 = int_to_ptr.vmem [resolvable:$false] %s643_s27 }
  0x22   : > { %s645_s28 = scalar_lea.vmem %s644_s27, 1024  ;;  %p646_p11 = scmp.lt.s32.totalorder %s821_s6, %s644_s27 }
  0x23   : > { %p641_p2 = pnand %p639_p0, %p625_p1  ;;  %p647_p4 = scmp.lt.s32.totalorder %s645_s28, %s638_s22 }
  0x25   : > { %p642_p12 = pneg %p641_p2  ;;  %p648_p5 = por %p647_p4, %p646_p11 }
  0x27   : > { %p649_p7 = pnand %p648_p5, %p642_p12 }
  0x29   : > { %652 = shalt.err (!%p649_p7)
}
  0x2a   : > { %s722_s29 = smov 128   ;;  %s723_s30 = smov 8  }
  0x2b   : > { %573 = dma.hbm_to_vmem [thread:$0]  (!%p817_p13), %s813_s4, 512, %s821_s6, %s823_s8, %s722_s29, %s722_s29, %s723_s30  }
  0x2c   : > { %p524_p9 = scmp.ge.s32.totalorder %s719_s15, 1  ;;  %p156_p1 = scmp.lt.s32.totalorder %s719_s15, 3 }
  0x2e   : > { %p157_p3 = pnand %p524_p9, %p156_p1 }
  0x2f   : > { %s854_s5 = sand.u32 (!%p157_p3), 1, %s711_s13  }
  0x30   : > { %160 = sbr.rel (%p157_p3) target bundleno = 807 (0x327), region = 32  ;;  %s525_s9 = sshll.u32 (!%p157_p3), %s854_s5, 5 }
  0x31   : > { %s163_s10 = scalar_lea.sflag (!%p157_p3), [#allocation3], %s854_s5  ;;  %s166_s11 = scalar_lea.vmem (!%p157_p3), [#allocation2], %s525_s9 }
  0x37   : > { %698 = dma.done.wait (%p793_p6), %s163_s10, 512  }
  0x38   : > { %700 = vsyncadd (%p793_p6), %s163_s10, 4294966784  ;;  %vm193_vm0 = vcmask 523264   ;;  %v864_v0 = vld [vmem:[%s166_s11] sm:$0xff]  ;;  %v866_v1 = vld [vmem:[%s166_s11 + $0x10] sm:$0xff]  ;;  %v724_v10 = vmov 0.0|0.0   ;;  %vm725_vm1 = vmmov 0   ;;  %v219_v16 = vlaneseq }
  0x39   : > { %v868_v2 = vld [vmem:[%s166_s11 + $0x8] sm:$0xff]  ;;  %v194_v3 = vsel %vm193_vm0, %v864_v0, 0.0  ;;  %v200_v4 = vsel %vm193_vm0, %v866_v1, 0.0  ;;  %v874_v5 = vld [vmem:[%s166_s11 + $0x18] sm:$0xff]  ;;  %v211_v8 = vld [vmem:[%s956_s1] sm:$0xff]  ;;  %560 = vmatprep.subr.bf16.mxu0 %v724_v10  ;;  %v726_v15 = vmov 0.0  }
  0x3a   : > { %195 = vadd.xlane.f32.xlu0 %v194_v3  ;;  %201 = vadd.xlane.f32.xlu1 %v200_v4  ;;  %v197_v6 = vsel %vm193_vm0, %v868_v2, 0.0  ;;  %v203_v7 = vsel %vm193_vm0, %v874_v5, 0.0  ;;  %v212_v9 = vld [vmem:[%s956_s1 + $0x8] sm:$0xff]  ;;  %v213_v12 = vld [vmem:[%s956_s1 + $0x10] sm:$0xff]  ;;  %v214_v13 = vld [vmem:[%s956_s1 + $0x18] sm:$0xff]  ;;  %v220_v17 = vand.u32 127, %v219_v16 }
  0x3b   : > { %v561_v11 = vpack.c.bf16 %v212_v9, %v211_v8  ;;  %v564_v14 = vpack.c.bf16 %v214_v13, %v213_v12  ;;  %552 = vmatprep.mubr.msk.f32.mxu0 %vm725_vm1, %v726_v15  ;;  %555 = vmatprep.subr.mxu1 %v726_v15  ;;  %v222_v18 = vshrl.u32 %v219_v16, 7  ;;  %vm230_vm2 = vcmask 130112   ;;  %v320_v41 = vld [vmem:[%s957_s2] sm:$0x3]  ;;  %s188_s27 = scalar_lea.vmem [#allocation5], %s525_s9  ;;  %s536_s29 = sshll.u32 %s771_s16, 9 }
  0x3c   : > { %557 = vmatprep.mubr.msk.f32.mxu1 %vm725_vm1, %v726_v15  ;;  %v225_v19 = vadd.s32 4294967288, %v220_v17  ;;  %v239_v20 = vadd.s32 4294967272, %v220_v17  ;;  %v232_v22 = vadd.s32 4294967280, %v220_v17  ;;  %vm237_vm3 = vcmask 195712   ;;  %s445_s28 = sshll.u32 %s188_s27, 4  ;;  %s909_s10 = scalar_lea.hbm %s958_s3, %s536_s29  ;;  %s903_s28 = int_to_ptr.vmem [resolvable:$true] %s445_s28 }
  0x3d   : > { %562 = vmatpush3.bf16.msra.mxu0 %v561_v11  ;;  %v223_v24 = vsub.s32 %v220_v17, %v222_v18  ;;  %vm244_vm4 = vcmask 261312   ;;  %vm246_vm5 = vcmask 261120   ;;  %vm325_vm6 = vcmask 1041408   ;;  %s432_s11 = scalar_lea.sflag [#allocation4], %s854_s5  ;;  %s653_s23 = scalar_lea.vmem %s903_s28, 512 }
  0x3e   : > { %198 = vadd.xlane.f32.xlu0 %v197_v6  ;;  %204 = vadd.xlane.f32.xlu1 %v203_v7  ;;  %v228_v26 = vsub.s32 %v225_v19, %v222_v18  ;;  %v242_v27 = vsub.s32 %v239_v20, %v222_v18  ;;  %v235_v28 = vsub.s32 %v232_v22, %v222_v18  ;;  %vm321_vm7 = vcmask 15360   ;;  %p654_p6 = scmp.ne.s32.totalorder %s903_s28, %s653_s23  ;;  %p965_p11 = scmp.ne.s32.totalorder %s962_s24, 0 }
  0x3f   : > { %563 = vmatprep.subr.bf16.mxu0 %v724_v10  ;;  %556 = vmatpush3.msk.msra.mxu1 %vm325_vm6, %v320_v41  ;;  %v406_v51 = vsub.s32 0, %v222_v18  ;;  %s727_s16 = smov [#allocation5]  }
  0x40   : > { %p655_p12 = pnand %p654_p6, %p965_p11  ;;  %s657_s4 = sshll.u32 %s727_s16, 4  ;;  %s658_s4 = int_to_ptr.vmem [resolvable:$false] %s657_s4 }
  0x41   : > { %565 = vmatpush3.bf16.msra.mxu0 %v564_v14  ;;  %s659_s6 = scalar_lea.vmem %s658_s4, 1024  ;;  %p660_p8 = scmp.lt.s32.totalorder %s903_s28, %s658_s4 }
  0x42   : > { %p656_p13 = pneg %p655_p12  ;;  %p661_p10 = scmp.lt.s32.totalorder %s659_s6, %s653_s23 }
  0x44   : > { %p662_p0 = por %p661_p10, %p660_p8 }
  0x46   : > { %p663_p2 = pnand %p662_p0, %p656_p13 }
  0xc7   : > { %v196_v21 = vpop.xlane.xlu0 %195  ;;  %v202_v23 = vpop.xlane.xlu1 %201 }
  0xc8   : > { %v207_v25 = vmul.f32 0.015625, %v196_v21  ;;  %v209_v29 = vmul.f32 0.015625, %v202_v23 }
  0xca   : > { %v224_v34 = vrot.slane %v207_v25, %v223_v24  ;;  %v236_v37 = vrot.slane %v209_v29, %v235_v28 }
  0xcb   : > { %v199_v30 = vpop.xlane.xlu0 %198  ;;  %v205_v31 = vpop.xlane.xlu1 %204 }
  0xcc   : > { %v208_v32 = vmul.f32 0.015625, %v199_v30  ;;  %v210_v33 = vmul.f32 0.015625, %v205_v31 }
  0xce   : > { %v229_v35 = vrot.slane %v208_v32, %v228_v26  ;;  %v243_v36 = vrot.slane %v210_v33, %v242_v27 }
  0xd0   : > { %v231_v38 = vsel %vm230_vm2, %v229_v35, %v224_v34 }
  0xd1   : > { %v238_v39 = vsel %vm237_vm3, %v236_v37, %v231_v38 }
  0xd2   : > { %v245_v40 = vsel %vm244_vm4, %v243_v36, %v238_v39 }
  0xd3   : > { %553 = vmatmul.mubr.msk.f32.vlgmr.msra.gmra.mrb[0].mxu0 %vm246_vm5, %v245_v40 }
 0x1a6   : > { %v315_v42 = vpop.f32.mrb[0].mxu0 }
 0x1a7   : > { %v319_v43 = vmax.f32 %v315_v42, 0.0  ;;  %v554_v44 = vpop.f32.mrb[1].mxu0 }
 0x1a9   : > { %558 = vmatmul.mubr.msk.f32.vlgmr.msra.gmra.mrb[0].mxu1 %vm321_vm7, %v319_v43 }
 0x27c   : > { %v395_v45 = vpop.f32.mrb[0].mxu1 }
 0x27d   : > { %v399_v46 = vsub.f32 0.0, %v395_v45  ;;  %v559_v47 = vpop.f32.mrb[1].mxu1 }
 0x27f   : > { %v400_v48 = vmul.f32 1.442695, %v399_v46 }
 0x281   : > { %619 = vpow2.f32 %v400_v48 }
 0x28b   : > { %v620_v49 = vpop.eup %619 }
 0x28c   : > { %v402_v50 = vadd.f32 1.0, %v620_v49 }
 0x28e   : > { %621 = vrcp.f32 %v402_v50 }
 0x298   : > { %v622_v52 = vpop.eup %621 }
 0x299   : > { %v407_v53 = vrot.slane %v622_v52, %v406_v51 }
 0x29b   : > { %413 = vbcast.lane.b32.xlu1 %v407_v53, 264  ;;  %409 = vbcast.lane.b32.xlu0 %v407_v53, 256 }
 0x29f   : > { %417 = vbcast.lane.b32.xlu1 %v407_v53, 272 }
 0x2a3   : > { %421 = vbcast.lane.b32.xlu1 %v407_v53, 280 }
 0x30d   : > { %v414_v54 = vpop.permute.xlu1 %413  ;;  %v410_v55 = vpop.permute.xlu0 %409 }
 0x30e   : > { %v424_v56 = vmul.f32 %v414_v54, %v868_v2  ;;  %v423_v57 = vmul.f32 %v410_v55, %v864_v0 }
 0x310   : > { %428 = vst.msk [vmem:[%s188_s27 + $0x8] sm:$0xff] %vm193_vm0, %v424_v56  ;;  %427 = vst.msk [vmem:[%s188_s27] sm:$0xff] %vm193_vm0, %v423_v57 }
 0x311   : > { %v418_v58 = vpop.permute.xlu1 %417 }
 0x312   : > { %v425_v59 = vmul.f32 %v418_v58, %v866_v1 }
 0x314   : > { %429 = vst.msk [vmem:[%s188_s27 + $0x10] sm:$0xff] %vm193_vm0, %v425_v59 }
 0x315   : > { %v422_v60 = vpop.permute.xlu1 %421 }
 0x316   : > { %v426_v61 = vmul.f32 %v422_v60, %v874_v5 }
 0x318   : > { %430 = vst.msk [vmem:[%s188_s27 + $0x18] sm:$0xff] %vm193_vm0, %v426_v61 }
 0x319   : > { %666 = shalt.err (!%p663_p2)
}
 0x31a   : > { %s667_s7 = scalar_lea.hbm %s909_s10, 512  ;;  %s671_s19 = scalar_lea.hbm %s958_s3, 1024 }
 0x31b   : > { %p668_p4 = scmp.ne.s32.totalorder %s909_s10, %s667_s7  ;;  %p672_p9 = scmp.lt.u32.totalorder %s909_s10, %s958_s3 }
 0x31c   : > { %p673_p1 = scmp.lt.u32.totalorder %s671_s19, %s667_s7  ;;  %p675_p6 = scmp.lt.u32.totalorder %s667_s7, %s909_s10 }
 0x31d   : > { %p669_p5 = pnand %p668_p4, %p965_p11 }
 0x31e   : > { %p674_p3 = por %p673_p1, %p672_p9 }
 0x31f   : > { %p670_p7 = pneg %p669_p5 }
 0x320   : > { %p676_p12 = por %p675_p6, %p674_p3 }
 0x322   : > { %p677_p13 = pnand %p676_p12, %p670_p7 }
 0x324   : > { %680 = shalt.err (!%p677_p13)
}
 0x325   : > { %s728_s26 = smov 128   ;;  %s729_s27 = smov 8  }
 0x326   : > { %568 = dma.vmem_to_hbm [thread:$0]  (%p965_p11), %s903_s28, 512, %s909_s10, %s432_s11, %s728_s26, %s728_s26, %s729_s27  }
 0x327 PF: > { %s460_s29 = sand.u32 1, %s707_s12   ;;  %p966_p8 = scmp.ne.s32.totalorder %s963_s25, 0 }
 0x328   : > { %p967_p10 = scmp.ge.s32.totalorder %s719_s15, 2  ;;  %s461_s30 = scalar_lea.sflag [#allocation4], %s460_s29 }
 0x32a   : > { %p575_p0 = pnand %p967_p10, %p966_p8 }
 0x32c   : > { %702 = dma.done.wait (!%p575_p0), %s461_s30, 512  }
 0x32d   : > { %704 = vsyncadd (!%p575_p0), %s461_s30, 4294966784  ;;  %p16_p2 = scmp.ge.s32.totalorder %s775_s18, 4   ;;  %s968_s12 = smov %s711_s13 }
 0x32e   : > { %s969_s13 = smov %s715_s14  ;;  %s970_s14 = smov %s787_s21 }
 0x32f   : > { %s971_s15 = smov %s775_s18  ;;  %18 = sbr.rel (!%p16_p2) target bundleno = 5 (0x5), region = 77 }
 0x336   :  { %466 = vsyncpa [#allocation3], 1 }
 0x337   :  { %468 = vsyncpa [#allocation3 + $0x1], 1 }
 0x338   :  { %469 = vsyncpa [#allocation4], 1 }
 0x339   :  { %471 = vsyncpa [#allocation4 + $0x1], 1 }

</bundles_post_ra>
